<compile_context>
chip_gen: v7x
topology: tpu7x:2x2x1
jax: 0.10.0
libtpu: 0.0.40
codegen_flags: <defaults>
</compile_context>

<pallas_src>
import functools

import jax
import jax.numpy as jnp
from jax.experimental import pallas as pl
from jax.experimental.pallas import tpu as pltpu


def _gcn_kernel(a_ref, x_ref, w_ref, o_ref, *, in_dim, out_dim):
    h1 = in_dim // 2
    h2 = in_dim // 4

    a = a_ref[...]          # (N, N)   f32, the only "large" operand
    x = x_ref[...]          # (N, in)  f32
    w = w_ref[...]          # (in + h1 + h2, h1) f32 packed weight slab

    # Static slices of the packed slab (transposed weights, torch (out,in) -> (in,out)).
    w1t = w[0:in_dim, 0:h1]                       # (in, in//2)
    w2t = w[in_dim:in_dim + h1, 0:h2]             # (in//2, in//4)
    w3t = w[in_dim + h1:in_dim + h1 + h2, 0:out_dim]  # (in//4, out)

    # layer 1: relu((A @ X) @ W1^T)
    h = jnp.dot(a, x, preferred_element_type=jnp.float32)
    h = jnp.dot(h, w1t, preferred_element_type=jnp.float32)
    h = jnp.maximum(h, 0.0)

    # layer 2: relu((A @ h) @ W2^T)
    h = jnp.dot(a, h, preferred_element_type=jnp.float32)
    h = jnp.dot(h, w2t, preferred_element_type=jnp.float32)
    h = jnp.maximum(h, 0.0)

    # layer 3: (A @ h) @ W3^T
    h = jnp.dot(a, h, preferred_element_type=jnp.float32)
    h = jnp.dot(h, w3t, preferred_element_type=jnp.float32)

    o_ref[...] = h.astype(o_ref.dtype)


def gcn_pack_weights(W1, W2, W3):
    """One-time init: pack transposed torch-layout weights into one f32 slab.

    Row layout: [ W1^T (in, in//2) ; W2^T (in//2, in//4) ; W3^T (in//4, out) ],
    zero-padded on the right to a common width of max(in//2, in//4, out).
    """
    in_dim = W1.shape[1]
    h1, h2, out_dim = W1.shape[0], W2.shape[0], W3.shape[0]
    width = max(h1, h2, out_dim)
    packed = jnp.zeros((in_dim + h1 + h2, width), jnp.float32)
    packed = packed.at[0:in_dim, 0:h1].set(W1.T.astype(jnp.float32))
    packed = packed.at[in_dim:in_dim + h1, 0:h2].set(W2.T.astype(jnp.float32))
    packed = packed.at[in_dim + h1:, 0:out_dim].set(W3.T.astype(jnp.float32))
    return packed


@functools.partial(jax.jit, static_argnames=("out_dim",))
def gcn_forward(X, A, w_packed, *, out_dim):
    """Per-call path: exactly one pallas_call, no glue ops."""
    N, in_dim = X.shape
    vmem = pl.BlockSpec(memory_space=pltpu.MemorySpace.VMEM)
    return pl.pallas_call(
        functools.partial(_gcn_kernel, in_dim=in_dim, out_dim=out_dim),
        out_shape=jax.ShapeDtypeStruct((N, out_dim), jnp.float32),
        in_specs=[vmem, vmem, vmem],
        out_specs=vmem,
    )(A, X, w_packed)


def _init_linear_weight(key, out_dim, in_dim):
    # Deterministic stand-in for torch's default kaiming-uniform init:
    # U(-1/sqrt(in_dim), 1/sqrt(in_dim)).
    bound = 1.0 / jnp.sqrt(jnp.float32(in_dim))
    return jax.random.uniform(
        key, (out_dim, in_dim), dtype=jnp.float32, minval=-bound, maxval=bound
    )


def _reference(X, A, W1, W2, W3):
    h = jax.nn.relu((A @ X) @ W1.T)
    h = jax.nn.relu((A @ h) @ W2.T)
    return (A @ h) @ W3.T


if __name__ == "__main__":
    key = jax.random.PRNGKey(0)
    k_x, k_a, k_w1, k_w2, k_w3 = jax.random.split(key, 5)

    N = 64          # number of graph nodes
    in_dim = 32     # input feature dim
    out_dim = 8     # output feature dim

    X = jax.random.normal(k_x, (N, in_dim), dtype=jnp.float32)
    A = jax.random.uniform(k_a, (N, N), dtype=jnp.float32)
    # row-normalize A (typical GCN adjacency); keeps values well-scaled
    A = A / jnp.sum(A, axis=1, keepdims=True)

    W1 = _init_linear_weight(k_w1, in_dim // 2, in_dim)       # (16, 32)
    W2 = _init_linear_weight(k_w2, in_dim // 4, in_dim // 2)  # (8, 16)
    W3 = _init_linear_weight(k_w3, out_dim, in_dim // 4)      # (8, 8)

    # One-time weight packing (init), outside the per-call path.
    w_packed = jax.block_until_ready(gcn_pack_weights(W1, W2, W3))

    out = gcn_forward(X, A, w_packed, out_dim=out_dim)
    jax.block_until_ready(out)

    ref = _reference(X, A, W1, W2, W3)
    assert out.shape == (N, out_dim), out.shape
    # f32 end-to-end; tolerance kept loose enough to cover TPU default matmul
    # precision regardless of how the f32 MXU pass is lowered.
    assert jnp.allclose(out, ref, atol=2e-3, rtol=2e-2), (
        float(jnp.max(jnp.abs(out - ref)))
    )
    print("KERNEL_OK")
</pallas_src>

<mosaic_0001>
module attributes {stable_mosaic.version = 11 : i64} {
  func.func @_gcn_kernel(%arg0: memref<64x64xf32, #tpu.memory_space<vmem>>, %arg1: memref<64x32xf32, #tpu.memory_space<vmem>>, %arg2: memref<56x16xf32, #tpu.memory_space<vmem>>, %arg3: memref<64x8xf32, #tpu.memory_space<vmem>>) attributes {dimension_semantics = [], scalar_prefetch = 0 : i64, scratch_operands = 0 : i64, tpu.core_type = #tpu.core_type<tc>} {
    %c0 = arith.constant 0 : index
    %c0_0 = arith.constant 0 : index
    %0 = vector.load %arg0[%c0, %c0_0] : memref<64x64xf32, #tpu.memory_space<vmem>>, vector<64x64xf32>
    %c0_1 = arith.constant 0 : index
    %c0_2 = arith.constant 0 : index
    %1 = vector.load %arg1[%c0_1, %c0_2] : memref<64x32xf32, #tpu.memory_space<vmem>>, vector<64x32xf32>
    %c0_3 = arith.constant 0 : index
    %c0_4 = arith.constant 0 : index
    %2 = vector.load %arg2[%c0_3, %c0_4] : memref<56x16xf32, #tpu.memory_space<vmem>>, vector<56x16xf32>
    %3 = vector.extract_strided_slice %2 {offsets = [0, 0], sizes = [32, 16], strides = [1, 1]} : vector<56x16xf32> to vector<32x16xf32>
    %4 = vector.extract_strided_slice %2 {offsets = [32, 0], sizes = [16, 8], strides = [1, 1]} : vector<56x16xf32> to vector<16x8xf32>
    %5 = vector.extract_strided_slice %2 {offsets = [48, 0], sizes = [8, 8], strides = [1, 1]} : vector<56x16xf32> to vector<8x8xf32>
    %cst = arith.constant dense<0.000000e+00> : vector<64x32xf32>
    %6 = tpu.matmul %0, %1, %cst {dimension_numbers = #tpu.dot_dimension_numbers<[1], [0], [0], [1], [0, 0, 1, 1], [], []>} : vector<64x64xf32>, vector<64x32xf32>, vector<64x32xf32> -> vector<64x32xf32>
    %cst_5 = arith.constant dense<0.000000e+00> : vector<64x16xf32>
    %7 = tpu.matmul %6, %3, %cst_5 {dimension_numbers = #tpu.dot_dimension_numbers<[1], [0], [0], [1], [0, 0, 1, 1], [], []>} : vector<64x32xf32>, vector<32x16xf32>, vector<64x16xf32> -> vector<64x16xf32>
    %cst_6 = arith.constant 0.000000e+00 : f32
    %8 = vector.broadcast %cst_6 : f32 to vector<64x16xf32>
    %9 = arith.maximumf %7, %8 : vector<64x16xf32>
    %cst_7 = arith.constant dense<0.000000e+00> : vector<64x16xf32>
    %10 = tpu.matmul %0, %9, %cst_7 {dimension_numbers = #tpu.dot_dimension_numbers<[1], [0], [0], [1], [0, 0, 1, 1], [], []>} : vector<64x64xf32>, vector<64x16xf32>, vector<64x16xf32> -> vector<64x16xf32>
    %cst_8 = arith.constant dense<0.000000e+00> : vector<64x8xf32>
    %11 = tpu.matmul %10, %4, %cst_8 {dimension_numbers = #tpu.dot_dimension_numbers<[1], [0], [0], [1], [0, 0, 1, 1], [], []>} : vector<64x16xf32>, vector<16x8xf32>, vector<64x8xf32> -> vector<64x8xf32>
    %cst_9 = arith.constant 0.000000e+00 : f32
    %12 = vector.broadcast %cst_9 : f32 to vector<64x8xf32>
    %13 = arith.maximumf %11, %12 : vector<64x8xf32>
    %cst_10 = arith.constant dense<0.000000e+00> : vector<64x8xf32>
    %14 = tpu.matmul %0, %13, %cst_10 {dimension_numbers = #tpu.dot_dimension_numbers<[1], [0], [0], [1], [0, 0, 1, 1], [], []>} : vector<64x64xf32>, vector<64x8xf32>, vector<64x8xf32> -> vector<64x8xf32>
    %cst_11 = arith.constant dense<0.000000e+00> : vector<64x8xf32>
    %15 = tpu.matmul %14, %5, %cst_11 {dimension_numbers = #tpu.dot_dimension_numbers<[1], [0], [0], [1], [0, 0, 1, 1], [], []>} : vector<64x8xf32>, vector<8x8xf32>, vector<64x8xf32> -> vector<64x8xf32>
    %c0_12 = arith.constant 0 : index
    %c0_13 = arith.constant 0 : index
    %16 = vector.load %arg3[%c0_12, %c0_13] : memref<64x8xf32, #tpu.memory_space<vmem>>, vector<64x8xf32>
    tpu.vector_store %arg3[%c0_12, %c0_13], %15 {strides = array<i32>} : memref<64x8xf32, #tpu.memory_space<vmem>>, vector<64x8xf32>,
    return
  }
}

</mosaic_0001>

<bundles_post_ra>
// kernel: gcn_forward.1
= control target key start
LH: loop header
LB: loop body
LE: loop exit
PB: predicated region body
PF: predicated region fallthrough
CT: control target
= control target key end

     0   :  { %vm37_vm0 = vcmask 523264   ;;  %vm167_vm1 = vcmask 261120   ;;  %vm410_vm2 = vcmask 130048   ;;  %vm653_vm3 = vcmask 64512   ;;  %s1327_s1 = inlined_call_operand.vmem [shape: f32[64,32], index: 1, kind: input, shape index: {}]   ;;  %s1328_s0 = inlined_call_operand.vmem [shape: f32[64,64], index: 0, kind: input, shape index: {}]   ;;  %s1329_s2 = inlined_call_operand.vmem [shape: f32[56,16], index: 2, kind: input, shape index: {}]   ;;  %s1330_s3 = inlined_call_operand.vmem [shape: f32[64,8], index: 3, kind: output, shape index: {}]  }
   0x1   :  { %v22_v0 = vld [vmem:[%s1327_s1] sm:$0xff]  ;;  %v23_v1 = vld [vmem:[%s1327_s1 + $0x8] sm:$0xff]  ;;  %v24_v2 = vld [vmem:[%s1327_s1 + $0x10] sm:$0xff] }
   0x2   :  { %v1056_v3 = vpack.c.bf16 %v23_v1, %v22_v0  ;;  %v25_v4 = vld [vmem:[%s1327_s1 + $0x18] sm:$0xff]  ;;  %v26_v6 = vld [vmem:[%s1327_s1 + $0x20] sm:$0xff]  ;;  %v27_v7 = vld [vmem:[%s1327_s1 + $0x28] sm:$0xff] }
   0x3   :  { %v1060_v5 = vpack.c.bf16 %v25_v4, %v24_v2  ;;  %v1159_v8 = vld [vmem:[%s1328_s0] sm:$0xff]  ;;  %v1064_v9 = vpack.c.bf16 %v27_v7, %v26_v6  ;;  %v28_v10 = vld [vmem:[%s1327_s1 + $0x30] sm:$0xff]  ;;  %v31_v12 = vld [vmem:[%s1329_s2 + $0x8] sm:$0xff] }
   0x4   :  { %1057 = vmatprep.subr.bf16.mxu0 %v1056_v3  ;;  %938 = vmatprep.mubr.msk.f32.mxu0 %vm37_vm0, %v1159_v8  ;;  %v30_v11 = vld [vmem:[%s1329_s2] sm:$0xff]  ;;  %v29_v13 = vld [vmem:[%s1327_s1 + $0x38] sm:$0xff]  ;;  %v32_v15 = vld [vmem:[%s1329_s2 + $0x10] sm:$0xff] }
   0x5   :  { %1059 = vmatpush3.bf16.msra.mxu0 %v1056_v3  ;;  %v1072_v14 = vpack.c.bf16 %v31_v12, %v30_v11  ;;  %v33_v16 = vld [vmem:[%s1329_s2 + $0x18] sm:$0xff]  ;;  %v1068_v18 = vpack.c.bf16 %v29_v13, %v28_v10  ;;  %v1184_v19 = vld [vmem:[%s1328_s0 + $0x8] sm:$0xff]  ;;  %v1189_v20 = vld [vmem:[%s1328_s0 + $0x10] sm:$0xff] }
   0x6   :  { %1061 = vmatprep.subr.bf16.mxu0 %v1060_v5  ;;  %v1076_v17 = vpack.c.bf16 %v33_v16, %v32_v15  ;;  %v1198_v21 = vld [vmem:[%s1328_s0 + $0x18] sm:$0xff]  ;;  %v1203_v22 = vld [vmem:[%s1328_s0 + $0x20] sm:$0xff]  ;;  %v1212_v23 = vld [vmem:[%s1328_s0 + $0x28] sm:$0xff] }
   0x7   :  { %1073 = vmatprep.subr.bf16.mxu1 %v1072_v14  ;;  %v1217_v24 = vld [vmem:[%s1328_s0 + $0x30] sm:$0xff]  ;;  %v1226_v25 = vld [vmem:[%s1328_s0 + $0x38] sm:$0xff]  ;;  %v34_v34 = vld [vmem:[%s1329_s2 + $0x20] sm:$0xff] }
   0x8   :  { %1075 = vmatpush3.bf16.msra.mxu1 %v1072_v14  ;;  %v35_v35 = vld [vmem:[%s1329_s2 + $0x28] sm:$0xff]  ;;  %v36_v1 = vld [vmem:[%s1329_s2 + $0x30] sm:$0xff] }
   0x9   :  { %1063 = vmatpush3.bf16.msra.mxu0 %v1060_v5  ;;  %1077 = vmatprep.subr.bf16.mxu1 %v1076_v17  ;;  %v1096_v36 = vpack.c.bf16 %v35_v35, %v34_v34 }
   0xa   :  { %1065 = vmatprep.subr.bf16.mxu0 %v1064_v9 }
   0xc   :  { %1079 = vmatpush3.bf16.msra.mxu1 %v1076_v17 }
   0xd   :  { %1067 = vmatpush3.bf16.msra.mxu0 %v1064_v9 }
   0xe   :  { %1069 = vmatprep.subr.bf16.mxu0 %v1068_v18 }
  0x11   :  { %1071 = vmatpush3.bf16.msra.mxu0 %v1068_v18 }
  0x12   :  { %1097 = vmatprep.subr.bf16.mxu0 %v1096_v36 }
  0x14   :  { %939 = vmatmul.mubr.msk.f32.vlgmr.msra.gmra.mrb[0].mxu0 %vm37_vm0, %v1184_v19 }
  0x15   :  { %941 = vmatprep.mubr.msk.f32.mxu0 %vm37_vm0, %v1189_v20  ;;  %1099 = vmatpush3.bf16.msra.mxu0 %v1096_v36 }
  0x16   :  { %1042 = vmatprep.subr.mxu0 %v36_v1 }
  0x18   :  { %942 = vmatmul.mubr.msk.f32.gmra.mrb[2].mxu0 %vm37_vm0, %v1198_v21 }
  0x19   :  { %944 = vmatprep.mubr.msk.f32.mxu0 %vm37_vm0, %v1203_v22 }
  0x1c   :  { %945 = vmatmul.mubr.msk.f32.gmra.mrb[4].mxu0 %vm37_vm0, %v1212_v23 }
  0x1d   :  { %947 = vmatprep.mubr.msk.f32.mxu0 %vm37_vm0, %v1217_v24 }
  0x20   :  { %948 = vmatmul.mubr.msk.f32.gmra.mrb[6].mxu0 %vm37_vm0, %v1226_v25 }
  0xe7   :  { %v940_v26 = vpop.f32.mrb[0].mxu0 }
  0xe8   :  { %v128_v27 = vpop.f32.mrb[1].mxu0 }
  0xe9   :  { %958 = vmatprep.mubr.msk.f32.mxu1 %vm167_vm1, %v128_v27 }
  0xea   :  { %959 = vmatmul.mubr.msk.f32.vlgmr.msra.gmra.mrb[0].mxu1 %vm167_vm1, %v940_v26 }
  0xeb   :  { %v943_v28 = vpop.f32.mrb[2].mxu0 }
  0xec   :  { %v138_v29 = vpop.f32.mrb[3].mxu0 }
  0xed   :  { %961 = vmatprep.mubr.msk.f32.mxu1 %vm167_vm1, %v138_v29 }
  0xee   :  { %962 = vmatmul.mubr.msk.f32.gmra.mrb[2].mxu1 %vm167_vm1, %v943_v28 }
  0xef   :  { %v946_v30 = vpop.f32.mrb[4].mxu0 }
  0xf0   :  { %v148_v31 = vpop.f32.mrb[5].mxu0 }
  0xf1   :  { %964 = vmatprep.mubr.msk.f32.mxu1 %vm167_vm1, %v148_v31 }
  0xf2   :  { %965 = vmatmul.mubr.msk.f32.gmra.mrb[4].mxu1 %vm167_vm1, %v946_v30 }
  0xf3   :  { %v949_v32 = vpop.f32.mrb[6].mxu0 }
  0xf4   :  { %v158_v33 = vpop.f32.mrb[7].mxu0 }
  0xf5   :  { %967 = vmatprep.mubr.msk.f32.mxu1 %vm167_vm1, %v158_v33 }
  0xf6   :  { %968 = vmatmul.mubr.msk.f32.gmra.mrb[6].mxu1 %vm167_vm1, %v949_v32 }
  0xf7   :  { %986 = vmatprep.mubr.msk.f32.mxu1 %vm37_vm0, %v1159_v8 }
 0x1bd   :  { %v960_v37 = vpop.f32.mrb[0].mxu1 }
 0x1be   :  { %v298_v38 = vmax.f32 %v960_v37, 0.0  ;;  %v258_v39 = vpop.f32.mrb[1].mxu1 }
 0x1bf   :  { %v297_v40 = vmax.f32 %v258_v39, 0.0 }
 0x1c1   :  { %v1080_v41 = vpack.c.bf16 %v298_v38, %v297_v40  ;;  %v963_v42 = vpop.f32.mrb[2].mxu1 }
 0x1c2   :  { %v300_v43 = vmax.f32 %v963_v42, 0.0  ;;  %v268_v44 = vpop.f32.mrb[3].mxu1 }
 0x1c3   :  { %v299_v45 = vmax.f32 %v268_v44, 0.0  ;;  %1081 = vmatprep.subr.bf16.mxu1 %v1080_v41 }
 0x1c4   :  { %1083 = vmatpush3.bf16.msra.mxu1 %v1080_v41 }
 0x1c5   :  { %v1084_v46 = vpack.c.bf16 %v300_v43, %v299_v45  ;;  %v966_v47 = vpop.f32.mrb[4].mxu1 }
 0x1c6   :  { %v302_v48 = vmax.f32 %v966_v47, 0.0  ;;  %v278_v49 = vpop.f32.mrb[5].mxu1 }
 0x1c7   :  { %v301_v50 = vmax.f32 %v278_v49, 0.0  ;;  %1085 = vmatprep.subr.bf16.mxu1 %v1084_v46 }
 0x1c8   :  { %1087 = vmatpush3.bf16.msra.mxu1 %v1084_v46 }
 0x1c9   :  { %v1088_v51 = vpack.c.bf16 %v302_v48, %v301_v50  ;;  %v969_v52 = vpop.f32.mrb[6].mxu1 }
 0x1ca   :  { %v304_v53 = vmax.f32 %v969_v52, 0.0  ;;  %v288_v54 = vpop.f32.mrb[7].mxu1 }
 0x1cb   :  { %v303_v55 = vmax.f32 %v288_v54, 0.0  ;;  %1089 = vmatprep.subr.bf16.mxu1 %v1088_v51 }
 0x1cc   :  { %1091 = vmatpush3.bf16.msra.mxu1 %v1088_v51 }
 0x1cd   :  { %v1092_v56 = vpack.c.bf16 %v304_v53, %v303_v55 }
 0x1cf   :  { %1093 = vmatprep.subr.bf16.mxu1 %v1092_v56 }
 0x1d0   :  { %1095 = vmatpush3.bf16.msra.mxu1 %v1092_v56 }
 0x1d3   :  { %987 = vmatmul.mubr.msk.f32.vlgmr.msra.gmra.mrb[8].mxu1 %vm37_vm0, %v1184_v19 }
 0x1d4   :  { %989 = vmatprep.mubr.msk.f32.mxu1 %vm37_vm0, %v1189_v20 }
 0x1d7   :  { %990 = vmatmul.mubr.msk.f32.gmra.mrb[10].mxu1 %vm37_vm0, %v1198_v21 }
 0x1d8   :  { %992 = vmatprep.mubr.msk.f32.mxu1 %vm37_vm0, %v1203_v22 }
 0x1db   :  { %993 = vmatmul.mubr.msk.f32.gmra.mrb[12].mxu1 %vm37_vm0, %v1212_v23 }
 0x1dc   :  { %995 = vmatprep.mubr.msk.f32.mxu1 %vm37_vm0, %v1217_v24 }
 0x1df   :  { %996 = vmatmul.mubr.msk.f32.gmra.mrb[14].mxu1 %vm37_vm0, %v1226_v25 }
 0x1e0   :  { %1030 = vmatprep.mubr.msk.f32.mxu1 %vm37_vm0, %v1159_v8 }
 0x2a6   :  { %v988_v57 = vpop.f32.mrb[8].mxu1 }
 0x2a7   :  { %v371_v58 = vpop.f32.mrb[9].mxu1 }
 0x2a8   :  { %1002 = vmatprep.mubr.msk.f32.mxu0 %vm410_vm2, %v371_v58 }
 0x2a9   :  { %1003 = vmatmul.mubr.msk.f32.vlgmr.msra.gmra.mrb[8].mxu0 %vm410_vm2, %v988_v57 }
 0x2aa   :  { %v991_v59 = vpop.f32.mrb[10].mxu1  ;;  %1043 = vmatpush3.msra.mxu0 %v36_v1 }
 0x2ab   :  { %v381_v60 = vpop.f32.mrb[11].mxu1 }
 0x2ac   :  { %1005 = vmatprep.mubr.msk.f32.mxu0 %vm410_vm2, %v381_v60 }
 0x2ad   :  { %1006 = vmatmul.mubr.msk.f32.gmra.mrb[10].mxu0 %vm410_vm2, %v991_v59 }
 0x2ae   :  { %v994_v61 = vpop.f32.mrb[12].mxu1 }
 0x2af   :  { %v391_v62 = vpop.f32.mrb[13].mxu1 }
 0x2b0   :  { %1008 = vmatprep.mubr.msk.f32.mxu0 %vm410_vm2, %v391_v62 }
 0x2b1   :  { %1009 = vmatmul.mubr.msk.f32.gmra.mrb[12].mxu0 %vm410_vm2, %v994_v61 }
 0x2b2   :  { %v997_v63 = vpop.f32.mrb[14].mxu1 }
 0x2b3   :  { %v401_v0 = vpop.f32.mrb[15].mxu1 }
 0x2b4   :  { %1011 = vmatprep.mubr.msk.f32.mxu0 %vm410_vm2, %v401_v0 }
 0x2b5   :  { %1012 = vmatmul.mubr.msk.f32.gmra.mrb[14].mxu0 %vm410_vm2, %v997_v63 }
 0x37c   :  { %v1004_v2 = vpop.f32.mrb[8].mxu0 }
 0x37d   :  { %v541_v3 = vmax.f32 %v1004_v2, 0.0  ;;  %v501_v4 = vpop.f32.mrb[9].mxu0 }
 0x37e   :  { %v540_v5 = vmax.f32 %v501_v4, 0.0 }
 0x380   :  { %v1100_v6 = vpack.c.bf16 %v541_v3, %v540_v5  ;;  %v1007_v7 = vpop.f32.mrb[10].mxu0 }
 0x381   :  { %v543_v8 = vmax.f32 %v1007_v7, 0.0  ;;  %v511_v9 = vpop.f32.mrb[11].mxu0 }
 0x382   :  { %v542_v10 = vmax.f32 %v511_v9, 0.0  ;;  %1101 = vmatprep.subr.bf16.mxu1 %v1100_v6 }
 0x383   :  { %1103 = vmatpush3.bf16.msra.mxu1 %v1100_v6 }
 0x384   :  { %v1104_v11 = vpack.c.bf16 %v543_v8, %v542_v10  ;;  %v1010_v12 = vpop.f32.mrb[12].mxu0 }
 0x385   :  { %v545_v13 = vmax.f32 %v1010_v12, 0.0  ;;  %v521_v14 = vpop.f32.mrb[13].mxu0 }
 0x386   :  { %v544_v15 = vmax.f32 %v521_v14, 0.0  ;;  %1105 = vmatprep.subr.bf16.mxu1 %v1104_v11 }
 0x387   :  { %1107 = vmatpush3.bf16.msra.mxu1 %v1104_v11 }
 0x388   :  { %v1108_v16 = vpack.c.bf16 %v545_v13, %v544_v15  ;;  %v1013_v17 = vpop.f32.mrb[14].mxu0 }
 0x389   :  { %v547_v18 = vmax.f32 %v1013_v17, 0.0  ;;  %v531_v26 = vpop.f32.mrb[15].mxu0 }
 0x38a   :  { %v546_v27 = vmax.f32 %v531_v26, 0.0  ;;  %1109 = vmatprep.subr.bf16.mxu1 %v1108_v16 }
 0x38b   :  { %1111 = vmatpush3.bf16.msra.mxu1 %v1108_v16 }
 0x38c   :  { %v1112_v28 = vpack.c.bf16 %v547_v18, %v546_v27 }
 0x38e   :  { %1113 = vmatprep.subr.bf16.mxu1 %v1112_v28 }
 0x38f   :  { %1115 = vmatpush3.bf16.msra.mxu1 %v1112_v28 }
 0x390   :  { %1116 = vmatprep.subr.mxu1 %v36_v1 }
 0x392   :  { %1031 = vmatmul.mubr.msk.f32.vlgmr.msra.gmra.mrb[16].mxu1 %vm37_vm0, %v1184_v19 }
 0x393   :  { %1033 = vmatprep.mubr.msk.f32.mxu1 %vm37_vm0, %v1189_v20  ;;  %1117 = vmatpush3.msra.mxu1 %v36_v1 }
 0x396   :  { %1034 = vmatmul.mubr.msk.f32.gmra.mrb[18].mxu1 %vm37_vm0, %v1198_v21 }
 0x397   :  { %1036 = vmatprep.mubr.msk.f32.mxu1 %vm37_vm0, %v1203_v22 }
 0x39a   :  { %1037 = vmatmul.mubr.msk.f32.gmra.mrb[20].mxu1 %vm37_vm0, %v1212_v23 }
 0x39b   :  { %1039 = vmatprep.mubr.msk.f32.mxu1 %vm37_vm0, %v1217_v24 }
 0x39e   :  { %1040 = vmatmul.mubr.msk.f32.gmra.mrb[22].mxu1 %vm37_vm0, %v1226_v25 }
 0x465   :  { %v1032_v19 = vpop.f32.mrb[16].mxu1 }
 0x466   :  { %v614_v29 = vpop.f32.mrb[17].mxu1 }
 0x467   :  { %1044 = vmatprep.mubr.msk.f32.mxu0 %vm653_vm3, %v614_v29 }
 0x468   :  { %1045 = vmatmul.mubr.msk.f32.vlgmr.msra.gmra.mrb[16].mxu0 %vm653_vm3, %v1032_v19 }
 0x469   :  { %v1035_v20 = vpop.f32.mrb[18].mxu1 }
 0x46a   :  { %v624_v21 = vpop.f32.mrb[19].mxu1 }
 0x46b   :  { %1047 = vmatprep.mubr.msk.f32.mxu0 %vm653_vm3, %v624_v21 }
 0x46c   :  { %1048 = vmatmul.mubr.msk.f32.gmra.mrb[18].mxu0 %vm653_vm3, %v1035_v20 }
 0x46d   :  { %v1038_v22 = vpop.f32.mrb[20].mxu1 }
 0x46e   :  { %v634_v23 = vpop.f32.mrb[21].mxu1 }
 0x46f   :  { %1050 = vmatprep.mubr.msk.f32.mxu0 %vm653_vm3, %v634_v23 }
 0x470   :  { %1051 = vmatmul.mubr.msk.f32.gmra.mrb[20].mxu0 %vm653_vm3, %v1038_v22 }
 0x471   :  { %v1041_v24 = vpop.f32.mrb[22].mxu1 }
 0x472   :  { %v644_v25 = vpop.f32.mrb[23].mxu1 }
 0x473   :  { %1053 = vmatprep.mubr.msk.f32.mxu1 %vm653_vm3, %v644_v25 }
 0x474   :  { %1054 = vmatmul.mubr.msk.f32.vlgmr.msra.gmra.mrb[24].mxu1 %vm653_vm3, %v1041_v24 }
 0x53b   :  { %v1046_v30 = vpop.f32.mrb[16].mxu0 }
 0x53c   :  { %784 = vst.msk [vmem:[%s1330_s3 + $0x8] sm:$0xff] %vm653_vm3, %v1046_v30  ;;  %v744_v31 = vpop.f32.mrb[17].mxu0 }
 0x53d   :  { %783 = vst.msk [vmem:[%s1330_s3] sm:$0xff] %vm653_vm3, %v744_v31 }
 0x53f   :  { %v1049_v32 = vpop.f32.mrb[18].mxu0 }
 0x540   :  { %786 = vst.msk [vmem:[%s1330_s3 + $0x18] sm:$0xff] %vm653_vm3, %v1049_v32  ;;  %v754_v33 = vpop.f32.mrb[19].mxu0 }
 0x541   :  { %785 = vst.msk [vmem:[%s1330_s3 + $0x10] sm:$0xff] %vm653_vm3, %v754_v33 }
 0x543   :  { %v1052_v34 = vpop.f32.mrb[20].mxu0 }
 0x544   :  { %788 = vst.msk [vmem:[%s1330_s3 + $0x28] sm:$0xff] %vm653_vm3, %v1052_v34  ;;  %v764_v35 = vpop.f32.mrb[21].mxu0 }
 0x545   :  { %787 = vst.msk [vmem:[%s1330_s3 + $0x20] sm:$0xff] %vm653_vm3, %v764_v35 }
 0x547   :  { %v1055_v36 = vpop.f32.mrb[24].mxu1 }
 0x548   :  { %790 = vst.msk [vmem:[%s1330_s3 + $0x38] sm:$0xff] %vm653_vm3, %v1055_v36  ;;  %v774_v37 = vpop.f32.mrb[25].mxu1 }
 0x549   :  { %789 = vst.msk [vmem:[%s1330_s3 + $0x30] sm:$0xff] %vm653_vm3, %v774_v37 }

</bundles_post_ra>
